<compile_context>
chip_gen: v6e
topology: v6e:2x2x1
jax: 0.10.0
libtpu: 0.0.40
codegen_flags: <defaults>
</compile_context>

<pallas_src>
import functools

import jax
import jax.numpy as jnp
from jax.experimental import pallas as pl
from jax.experimental.pallas import tpu as pltpu


def _round_up(x, m):
    return ((x + m - 1) // m) * m


def _choose_tile_n(n, tile_n_max):
    """Pick the row-tile size.

    - n <= tile_n_max and small: one full-dim tile (no divisibility issue).
    - n <= tile_n_max and large: split into 2 tiles so both v7x TCs get work.
    - otherwise: tile_n_max rounded to a sublane multiple.
    """
    if n <= tile_n_max:
        if n >= 512:
            return min(_round_up(pl.cdiv(n, 2), 8), n)
        return n
    return _round_up(tile_n_max, 8)


def _fused_mlp_kernel(x_ref, *rest, num_layers, compute_dtype):
    """Fused (Linear + bias + ReLU) x num_layers on a single row-tile.

    rest = (w_0, b_0, w_1, b_1, ..., w_{L-1}, b_{L-1}, o_ref)

    Each w_l is [Cin_l, Cout_l] (true shape, VMEM-resident, single-buffered),
    each b_l is [1, Cout_l] float32. The activation `h` changes width per
    layer and never touches HBM between layers.
    """
    o_ref = rest[-1]
    h = x_ref[...].astype(compute_dtype)            # [tile_n, C_0]
    for l in range(num_layers):                     # static unroll over layers
        w = rest[2 * l][...]                        # [Cin_l, Cout_l], bf16
        b = rest[2 * l + 1][...]                    # [1, Cout_l],     f32
        y = jnp.dot(h, w, preferred_element_type=jnp.float32)   # MXU, f32 acc
        y = jnp.maximum(y + b, 0.0)                 # f32 epilogue: bias + ReLU
        h = y.astype(compute_dtype) if l + 1 < num_layers else y
    o_ref[...] = h.astype(o_ref.dtype)


def mlp_forward(x, params, *, compute_dtype=jnp.bfloat16, out_dtype=None,
                tile_n_max=None):
    """x: [N, C0]; params: list of (w [C_in, C_out], b [C_out]) -> [N, C_last]."""
    n, c0 = x.shape
    num_layers = len(params)
    c_dims = [c0] + [w.shape[1] for (w, _) in params]
    c_last = c_dims[-1]
    c_max = max(c_dims)
    out_dtype = x.dtype if out_dtype is None else out_dtype

    # Row-tile sizing: bigger tiles amortize per-step overhead (v5e/v6e),
    # but shrink for very wide layers to respect the VMEM budget (v7x: 64 MiB).
    if tile_n_max is None:
        tile_n_max = 1024 if c_max <= 512 else (512 if c_max <= 2048 else 256)
    tile_n = _choose_tile_n(n, tile_n_max)
    grid_n = pl.cdiv(n, tile_n)

    # Parameters: cast weights to the MXU compute dtype (bf16), biases to f32
    # rows of shape [1, C_out]. Parameter-sized only; no activation HBM pass.
    flat_inputs = [x]
    for (w, b) in params:
        flat_inputs.append(w.astype(compute_dtype))
        flat_inputs.append(b.astype(jnp.float32).reshape(1, -1))

    # BlockSpecs. x / out are row-tiled; their lane dim equals the full array
    # dim (always legal), so no host-side lane padding or output slicing.
    in_specs = [pl.BlockSpec((tile_n, c0), lambda i: (i, 0))]
    for (w, _) in params:
        ci, co = w.shape
        # Constant index_map + single buffer: fetched once, resident for the
        # whole row loop, and not double-buffered (halves weight VMEM).
        in_specs.append(
            pl.BlockSpec((ci, co), lambda i: (0, 0), pipeline_mode=pl.Buffered(1)))
        in_specs.append(
            pl.BlockSpec((1, co), lambda i: (0, 0), pipeline_mode=pl.Buffered(1)))
    out_specs = pl.BlockSpec((tile_n, c_last), lambda i: (i, 0))

    # Explicit scoped-VMEM budget: resident weights/biases + double-buffered
    # in/out row tiles + f32 per-layer temps, with headroom. Capped at 64 MiB
    # so the same config is valid on v7x as well as v5e/v6e.
    cbytes = jnp.dtype(compute_dtype).itemsize
    weight_bytes = sum(w.size * cbytes for (w, _) in params)
    bias_bytes = sum(b.size * 4 for (_, b) in params)
    act_bytes = (2 * tile_n * c0 * x.dtype.itemsize
                 + 2 * tile_n * c_last * jnp.dtype(out_dtype).itemsize)
    tmp_bytes = 4 * tile_n * c_max * 4
    est = weight_bytes + bias_bytes + act_bytes + tmp_bytes
    vmem_limit = int(min(max(est * 3 // 2, 32 << 20), 64 << 20))

    kernel = functools.partial(_fused_mlp_kernel, num_layers=num_layers,
                               compute_dtype=compute_dtype)
    return pl.pallas_call(
        kernel,
        out_shape=jax.ShapeDtypeStruct((n, c_last), out_dtype),
        grid=(grid_n,),
        in_specs=in_specs,
        out_specs=out_specs,
        compiler_params=pltpu.CompilerParams(
            # Row tiles are independent -> shard across both TCs on v7x.
            dimension_semantics=("parallel",),
            vmem_limit_bytes=vmem_limit,
        ),
    )(*flat_inputs)


class MLPPallas:
    """JAX/Pallas equivalent of MLP(channels, act='relu', norm=None, bias=True)."""

    def __init__(self, channels, key, dtype=jnp.float32):
        self.channels = tuple(channels)
        self.params = []
        for i in range(len(channels) - 1):
            c_in, c_out = channels[i], channels[i + 1]
            key, wk, bk = jax.random.split(key, 3)
            # Deterministic init mimicking PyTorch nn.Linear defaults:
            # U(-1/sqrt(fan_in), 1/sqrt(fan_in)) for both weight and bias.
            bound = 1.0 / jnp.sqrt(jnp.asarray(c_in, dtype))
            # stored as [C_in, C_out] (i.e. PyTorch weight.T)
            w = jax.random.uniform(wk, (c_in, c_out), dtype, -bound, bound)
            b = jax.random.uniform(bk, (c_out,), dtype, -bound, bound)
            self.params.append((w, b))

    def __call__(self, x):
        return mlp_forward(x, self.params)


if __name__ == "__main__":
    key = jax.random.PRNGKey(0)
    channels = [32, 64, 32]          # MLP([32, 64, 32])
    batch = 8

    key, xk, pk = jax.random.split(key, 3)
    x = jax.random.normal(xk, (batch, channels[0]), jnp.float32)

    mlp = MLPPallas(channels, pk)
    out = mlp(x)
    out = jax.block_until_ready(out)
    assert out.shape == (batch, channels[-1])

    # Pure-JAX reference emulating the same bf16-input / f32-accumulate math.
    # (bf16 on the MXU is an intentional precision trade-off vs f32 PyTorch.)
    ref = x
    for (w, b) in mlp.params:
        y = jnp.dot(ref.astype(jnp.bfloat16), w.astype(jnp.bfloat16),
                    preferred_element_type=jnp.float32)
        ref = jnp.maximum(y + b.astype(jnp.float32), 0.0)
    ref = ref.astype(x.dtype)
    assert jnp.allclose(out, ref, atol=2e-2, rtol=2e-2), (
        float(jnp.max(jnp.abs(out - ref))))

    print("KERNEL_OK")
</pallas_src>

<mosaic_0001>
module attributes {stable_mosaic.version = 11 : i64} {
  func.func @_fused_mlp_kernel(%arg0: i32, %arg1: memref<8x32xf32, #tpu.memory_space<vmem>>, %arg2: memref<32x64xbf16, #tpu.memory_space<vmem>>, %arg3: memref<1x64xf32, #tpu.memory_space<vmem>>, %arg4: memref<64x32xbf16, #tpu.memory_space<vmem>>, %arg5: memref<1x32xf32, #tpu.memory_space<vmem>>, %arg6: memref<8x32xf32, #tpu.memory_space<vmem>>) attributes {dimension_semantics = [#tpu.dimension_semantics<parallel>], iteration_bounds = array<i64: 1>, scalar_prefetch = 0 : i64, scratch_operands = 0 : i64, tpu.core_type = #tpu.core_type<tc>, window_params = [{transform_indices = @transform_0, window_bounds = array<i64: 8, 32>}, {pipeline_mode = #tpu.pipeline_mode<synchronous>, transform_indices = @transform_1, window_bounds = array<i64: 32, 64>}, {pipeline_mode = #tpu.pipeline_mode<synchronous>, transform_indices = @transform_2, window_bounds = array<i64: 1, 64>}, {pipeline_mode = #tpu.pipeline_mode<synchronous>, transform_indices = @transform_3, window_bounds = array<i64: 64, 32>}, {pipeline_mode = #tpu.pipeline_mode<synchronous>, transform_indices = @transform_4, window_bounds = array<i64: 1, 32>}, {transform_indices = @transform_5, window_bounds = array<i64: 8, 32>}]} {
    %c0 = arith.constant 0 : index
    %c0_0 = arith.constant 0 : index
    %0 = vector.load %arg1[%c0, %c0_0] : memref<8x32xf32, #tpu.memory_space<vmem>>, vector<8x32xf32>
    %1 = arith.truncf %0 : vector<8x32xf32> to vector<8x32xbf16>
    %c0_1 = arith.constant 0 : index
    %c0_2 = arith.constant 0 : index
    %2 = vector.load %arg2[%c0_1, %c0_2] : memref<32x64xbf16, #tpu.memory_space<vmem>>, vector<32x64xbf16>
    %c0_3 = arith.constant 0 : index
    %c0_4 = arith.constant 0 : index
    %3 = vector.load %arg3[%c0_3, %c0_4] : memref<1x64xf32, #tpu.memory_space<vmem>>, vector<1x64xf32>
    %cst = arith.constant dense<0.000000e+00> : vector<8x64xf32>
    %4 = tpu.matmul %1, %2, %cst {dimension_numbers = #tpu.dot_dimension_numbers<[1], [0], [0], [1], [0, 0, 1, 1], [], []>} : vector<8x32xbf16>, vector<32x64xbf16>, vector<8x64xf32> -> vector<8x64xf32>
    %5 = vector.broadcast %3 : vector<1x64xf32> to vector<8x64xf32>
    %6 = arith.addf %4, %5 : vector<8x64xf32>
    %cst_5 = arith.constant 0.000000e+00 : f32
    %7 = vector.broadcast %cst_5 : f32 to vector<8x64xf32>
    %8 = arith.maximumf %6, %7 : vector<8x64xf32>
    %9 = arith.truncf %8 : vector<8x64xf32> to vector<8x64xbf16>
    %c0_6 = arith.constant 0 : index
    %c0_7 = arith.constant 0 : index
    %10 = vector.load %arg4[%c0_6, %c0_7] : memref<64x32xbf16, #tpu.memory_space<vmem>>, vector<64x32xbf16>
    %c0_8 = arith.constant 0 : index
    %c0_9 = arith.constant 0 : index
    %11 = vector.load %arg5[%c0_8, %c0_9] : memref<1x32xf32, #tpu.memory_space<vmem>>, vector<1x32xf32>
    %cst_10 = arith.constant dense<0.000000e+00> : vector<8x32xf32>
    %12 = tpu.matmul %9, %10, %cst_10 {dimension_numbers = #tpu.dot_dimension_numbers<[1], [0], [0], [1], [0, 0, 1, 1], [], []>} : vector<8x64xbf16>, vector<64x32xbf16>, vector<8x32xf32> -> vector<8x32xf32>
    %13 = vector.broadcast %11 : vector<1x32xf32> to vector<8x32xf32>
    %14 = arith.addf %12, %13 : vector<8x32xf32>
    %cst_11 = arith.constant 0.000000e+00 : f32
    %15 = vector.broadcast %cst_11 : f32 to vector<8x32xf32>
    %16 = arith.maximumf %14, %15 : vector<8x32xf32>
    %c0_12 = arith.constant 0 : index
    %c0_13 = arith.constant 0 : index
    %17 = vector.load %arg6[%c0_12, %c0_13] : memref<8x32xf32, #tpu.memory_space<vmem>>, vector<8x32xf32>
    tpu.vector_store %arg6[%c0_12, %c0_13], %16 {strides = array<i32>} : memref<8x32xf32, #tpu.memory_space<vmem>>, vector<8x32xf32>,
    return
  }
  func.func @transform_0(%arg0: i32) -> (i32, i32) {
    %c0_i32 = arith.constant 0 : i32
    %c0_i32_0 = arith.constant 0 : i32
    return %arg0, %c0_i32 : i32, i32
  }
  func.func @transform_1(%arg0: i32) -> (i32, i32) {
    %c0_i32 = arith.constant 0 : i32
    %c0_i32_0 = arith.constant 0 : i32
    %c0_i32_1 = arith.constant 0 : i32
    return %c0_i32, %c0_i32_0 : i32, i32
  }
  func.func @transform_2(%arg0: i32) -> (i32, i32) {
    %c0_i32 = arith.constant 0 : i32
    %c0_i32_0 = arith.constant 0 : i32
    %c0_i32_1 = arith.constant 0 : i32
    return %c0_i32, %c0_i32_0 : i32, i32
  }
  func.func @transform_3(%arg0: i32) -> (i32, i32) {
    %c0_i32 = arith.constant 0 : i32
    %c0_i32_0 = arith.constant 0 : i32
    %c0_i32_1 = arith.constant 0 : i32
    return %c0_i32, %c0_i32_0 : i32, i32
  }
  func.func @transform_4(%arg0: i32) -> (i32, i32) {
    %c0_i32 = arith.constant 0 : i32
    %c0_i32_0 = arith.constant 0 : i32
    %c0_i32_1 = arith.constant 0 : i32
    return %c0_i32, %c0_i32_0 : i32, i32
  }
  func.func @transform_5(%arg0: i32) -> (i32, i32) {
    %c0_i32 = arith.constant 0 : i32
    %c0_i32_0 = arith.constant 0 : i32
    return %arg0, %c0_i32 : i32, i32
  }
}

</mosaic_0001>

<bundles_post_ra>
// kernel: tpu_custom_call.1
= control target key start
LH: loop header
LB: loop body
LE: loop exit
PB: predicated region body
PF: predicated region fallthrough
CT: control target
= control target key end

     0   :  { %v261_v1 = vmov 0.0   ;;  %vm262_vm0 = vmmov 0   ;;  %vm47_vm1 = vcmask 261120   ;;  %s326_s0 = inlined_call_operand.vmem [shape: f32[8,32], index: 0, kind: input, shape index: {}]   ;;  %s327_s1 = inlined_call_operand.vmem [shape: bf16[32,64], index: 1, kind: input, shape index: {}]   ;;  %s328_s2 = inlined_call_operand.vmem [shape: f32[1,64], index: 2, kind: input, shape index: {}]   ;;  %s329_s3 = inlined_call_operand.vmem [shape: bf16[64,32], index: 3, kind: input, shape index: {}]   ;;  %s330_s4 = inlined_call_operand.vmem [shape: f32[1,32], index: 4, kind: input, shape index: {}]   ;;  %s331_s5 = inlined_call_operand.hbm [shape: f32[8,32], index: 5, kind: output, shape index: {}]  }
   0x1   :  { %v233_v0 = vld [vmem:[%s327_s1 + $0x8] sm:$0xff]   ;;  %210 = vmatprep.subr.bf16.mxu0 %v261_v1  ;;  %v234_v2 = vld [vmem:[%s327_s1] sm:$0xff]   ;;  %218 = vmatprep.subr.bf16.mxu1 %v261_v1  ;;  %v235_v4 = vld [vmem:[%s329_s3 + $0x18] sm:$0xff]  }
   0x2   :  { %211 = vmatpush3.bf16.msra.mxu0 %v233_v0  ;;  %214 = vmatprep.mubr.msk.bf16.mxu0 %vm262_vm0, %v261_v1  ;;  %v22_v3 = vld [vmem:[%s326_s0] sm:$0xff]  ;;  %v236_v5 = vld [vmem:[%s329_s3 + $0x10] sm:$0xff]  }
   0x3   :  { %212 = vmatprep.subr.bf16.mxu0 %v261_v1  ;;  %226 = vmatprep.mubr.msk.bf16.mxu1 %vm262_vm0, %v261_v1  ;;  %v23_v6 = vpack.c.bf16 %v22_v3, %v22_v3 }
   0x4   :  { %219 = vmatpush3.bf16.msra.mxu1 %v235_v4 }
   0x5   :  { %220 = vmatprep.subr.bf16.mxu1 %v261_v1 }
   0x6   :  { %213 = vmatpush3.bf16.msra.mxu0 %v234_v2 }
   0x7   :  { %10 = vsyncpa [#allocation3], 0  ;;  %v237_v7 = vld [vmem:[%s329_s3 + $0x8] sm:$0xff]   ;;  %v238_v8 = vld [vmem:[%s329_s3] sm:$0xff]   ;;  %vm132_vm2 = vcmask 523264   ;;  %s263_s3 = smov [#allocation2]  }
   0x8   :  { %221 = vmatpush3.bf16.msra.mxu1 %v236_v5  ;;  %v192_v9 = vld [vmem:[%s328_s2] ss:$0 sm:$0xff]  ;;  %s184_s9 = sshll.u32 %s263_s3, 4  ;;  %s185_s9 = int_to_ptr.vmem [resolvable:$true] %s184_s9 }
   0x9   :  { %215 = vmatmul.mubr.msk.bf16.vlgmr.msra.gmra.mxu0 %vm47_vm1, %v23_v6  ;;  %222 = vmatprep.subr.bf16.mxu1 %v261_v1  ;;  %v196_v17 = vld [vmem:[%s330_s4] ss:$0 sm:$0xff]  ;;  %s239_s2 = scalar_lea.vmem %s185_s9, 128  ;;  %p244_p1 = scmp.lt.s32.totalorder %s185_s9, %s185_s9 }
   0xa   :  { %p240_p0 = scmp.ne.s32.totalorder %s185_s9, %s239_s2  ;;  %p245_p2 = scmp.lt.s32.totalorder %s239_s2, %s239_s2 }
   0xc   :  { %223 = vmatpush3.bf16.msra.mxu1 %v237_v7  ;;  %p246_p3 = por %p245_p2, %p244_p1 }
   0xd   :  { %224 = vmatprep.subr.bf16.mxu1 %v261_v1 }
   0xe   :  { %p247_p4 = pnand %p246_p3, %p240_p0 }
  0x10   :  { %225 = vmatpush3.bf16.msra.mxu1 %v238_v8 }
  0xc9   :  { %v85_v10 = vpop.f32.mrf.mxu0 }
  0xca   :  { %v86_v11 = vadd.f32 %v192_v9, %v85_v10 }
  0xcb   :  { %v216_v12 = vpop.f32.mrf.mxu0 }
  0xcc   :  { %v91_v13 = vmax.f32 %v86_v11, 0.0 }
  0xcd   :  { %v88_v14 = vpop.f32.mrf.mxu0 }
  0xce   :  { %v92_v15 = vpack.c.bf16 %v91_v13, %v91_v13 }
  0xcf   :  { %v217_v16 = vpop.f32.mrf.mxu0 }
  0xd0   :  { %227 = vmatmul.mubr.msk.bf16.vlgmr.msra.gmra.mxu1 %vm132_vm2, %v92_v15 }
 0x190   :  { %v170_v18 = vpop.f32.mrf.mxu1 }
 0x191   :  { %v171_v19 = vadd.f32 %v196_v17, %v170_v18 }
 0x192   :  { %v228_v20 = vpop.f32.mrf.mxu1 }
 0x193   :  { %v176_v21 = vmax.f32 %v171_v19, 0.0 }
 0x194   :  { %v173_v22 = vpop.f32.mrf.mxu1 }
 0x195   :  { %177 = vst.msk [vmem:[#allocation2] sm:$0xff] %vm47_vm1, %v176_v21 }
 0x196   :  { %v229_v23 = vpop.f32.mrf.mxu1 }
 0x197   :  { %250 = shalt.err (!%p247_p4)
}
 0x198   :  { %187 = dma.vmem_to_hbm [thread:$0]  %s185_s9, 128, %s331_s5, [#allocation3]  }
 0x199   :  { %259 = dma.done.wait [#allocation3], 128  }
 0x19a   :  { %260 = vsyncadd [#allocation3], 4294967168 }
 0x19b   :  { %191 = vsyncpa [#allocation3], 1 }

</bundles_post_ra>
